<compile_context>
chip_gen: v6e
topology: v6e:2x2x1
jax: 0.10.0
libtpu: 0.0.40
codegen_flags: <defaults>
</compile_context>

<pallas_src>
import jax
import jax.numpy as jnp
from jax.experimental import pallas as pl
from jax.experimental.pallas import tpu as pltpu

# ----------------------------- model config ---------------------------------
LATENT_FEATURES = 5
CODER_WIDTH = 32
CODER_LAYERS = 3          # -> 2 hidden (width->width) layers after the first
OUT_FEATURES = 16
REPS = 8                  # batch rows packed per sublane row (8*16 = 128 lanes)


def _round_up(n, m):
    return ((n + m - 1) // m) * m


def _cdiv(a, b):
    return -(-a // b)


def _choose_tm(batch):
    """Batch-tile (in original batch rows).  Single step up to 1024 rows
    (overhead-dominated regime); above that an even step count so both v7x
    TensorCores get equal work, with tm a multiple of 128 so the packed
    (tm/8, ...) blocks satisfy the (8,128)/(16,128) tiling rules while
    keeping batch padding small."""
    b8 = _round_up(batch, REPS)
    if b8 <= 1024:
        return b8                     # one grid step; block dims == full dims
    steps = _cdiv(b8, 1024)
    steps += steps % 2                # even -> balanced across 2 TensorCores
    return _round_up(_cdiv(b8, steps), 128)


def _block_diag(w, reps):
    """Repeat w (din, dout) `reps` times along the diagonal -> (reps*din, reps*dout)."""
    din, dout = w.shape
    eye = jnp.eye(reps, dtype=w.dtype)
    return (eye[:, None, :, None] * w[None, :, None, :]).reshape(
        reps * din, reps * dout)


# ------------------------------ Pallas kernel --------------------------------
def decoder_kernel(x_ref, w1_ref, w23_ref, w4_ref, b_ref, o_ref):
    # x_ref : (tm/8, 8*LATENT)   bf16   (8 batch rows packed per sublane row)
    # w1_ref: (8*LATENT, 8*W)    bf16   block-diagonal Linear(5->32)
    # w23_ref: (2, 8*W, 8*W)     bf16   block-diagonal Linear(32->32) x2
    # w4_ref: (8*W, 8*OUT)       bf16   block-diagonal Linear(32->16)
    # b_ref : (4, 8*W)           f32    tiled biases (row 3 uses first 8*OUT)
    # o_ref : (tm/8, 8*OUT=128)  f32    lane-dense output
    h = jnp.dot(x_ref[...], w1_ref[...], preferred_element_type=jnp.float32)
    h = jnp.maximum(h + b_ref[0:1, :], 0.0)
    for l in range(CODER_LAYERS - 1):                     # two hidden layers
        h = jnp.dot(h.astype(jnp.bfloat16), w23_ref[l],
                    preferred_element_type=jnp.float32)
        h = jnp.maximum(h + b_ref[l + 1:l + 2, :], 0.0)
    h = jnp.dot(h.astype(jnp.bfloat16), w4_ref[...],
                preferred_element_type=jnp.float32)
    o_ref[...] = jnp.tanh(h + b_ref[3:4, :REPS * OUT_FEATURES])


def decoder_forward(x, params):
    """x: (B, LATENT_FEATURES) float32. Returns (B, OUT_FEATURES) float32."""
    (w1, b1), (w2, b2), (w3, b3), (w4, b4) = params
    B = x.shape[0]
    tm = _choose_tm(B)
    B_pad = _round_up(B, tm)

    # bf16 input (half the x HBM traffic); pad only the batch rows.
    x_p = x.astype(jnp.bfloat16)
    if B_pad != B:
        x_p = jnp.pad(x_p, ((0, B_pad - B), (0, 0)))
    # Free row-major view: 8 consecutive batch rows per sublane row.
    x_packed = x_p.reshape(B_pad // REPS, REPS * LATENT_FEATURES)

    # Block-diagonal bf16 weights (built once, tiny: < 0.5 MiB total).
    w1_bd = _block_diag(w1.astype(jnp.float32), REPS).astype(jnp.bfloat16)
    w23_bd = jnp.stack([
        _block_diag(w2.astype(jnp.float32), REPS),
        _block_diag(w3.astype(jnp.float32), REPS),
    ]).astype(jnp.bfloat16)
    w4_bd = _block_diag(w4.astype(jnp.float32), REPS).astype(jnp.bfloat16)

    # All biases in one f32 array (fewer prologue DMAs).
    b_all = jnp.zeros((4, REPS * CODER_WIDTH), jnp.float32)
    b_all = b_all.at[0].set(jnp.tile(b1.astype(jnp.float32), REPS))
    b_all = b_all.at[1].set(jnp.tile(b2.astype(jnp.float32), REPS))
    b_all = b_all.at[2].set(jnp.tile(b3.astype(jnp.float32), REPS))
    b_all = b_all.at[3, :REPS * OUT_FEATURES].set(
        jnp.tile(b4.astype(jnp.float32), REPS))

    grid = (B_pad // tm,)
    tm8 = tm // REPS

    def const_spec(shape):
        ndim = len(shape)
        return pl.BlockSpec(shape, lambda i, _n=ndim: (0,) * _n)

    out_packed = pl.pallas_call(
        decoder_kernel,
        out_shape=jax.ShapeDtypeStruct(
            (B_pad // REPS, REPS * OUT_FEATURES), jnp.float32),
        grid_spec=pltpu.PrefetchScalarGridSpec(
            num_scalar_prefetch=0,
            grid=grid,
            in_specs=[
                pl.BlockSpec((tm8, REPS * LATENT_FEATURES), lambda i: (i, 0)),
                const_spec(w1_bd.shape),
                const_spec(w23_bd.shape),
                const_spec(w4_bd.shape),
                const_spec(b_all.shape),
            ],
            out_specs=pl.BlockSpec((tm8, REPS * OUT_FEATURES),
                                   lambda i: (i, 0)),
        ),
        compiler_params=pltpu.CompilerParams(
            dimension_semantics=("parallel",)),
    )(x_packed, w1_bd, w23_bd, w4_bd, b_all)

    # Free row-major view back to (B_pad, OUT), drop padded rows.
    return out_packed.reshape(B_pad, OUT_FEATURES)[:B]


# ------------------------- deterministic parameters ---------------------------
def init_params(key):
    """Weights stored as (in_features, out_features) for x @ W + b."""
    dims = [LATENT_FEATURES] + [CODER_WIDTH] * CODER_LAYERS + [OUT_FEATURES]
    params = []
    for din, dout in zip(dims[:-1], dims[1:]):
        key, kw, kb = jax.random.split(key, 3)
        bound = 1.0 / jnp.sqrt(din)
        w = jax.random.uniform(kw, (din, dout), jnp.float32, -bound, bound)
        b = jax.random.uniform(kb, (dout,), jnp.float32, -bound, bound)
        params.append((w, b))
    return params


def reference_forward(x, params):
    h = x
    for (w, b) in params[:-1]:
        h = jnp.maximum(h @ w + b, 0.0)
    w, b = params[-1]
    return jnp.tanh(h @ w + b)


# ----------------------------------- main -------------------------------------
if __name__ == "__main__":
    key = jax.random.PRNGKey(0)
    key, kx = jax.random.split(key)

    batch = 8
    x = jax.random.normal(kx, (batch, LATENT_FEATURES), dtype=jnp.float32)
    params = init_params(key)

    out = jax.block_until_ready(decoder_forward(x, params))
    ref = reference_forward(x, params)
    assert out.shape == (batch, OUT_FEATURES), out.shape
    # bf16 MXU inputs -> loosened tolerance vs f32 reference.
    assert jnp.allclose(out, ref, atol=3e-2, rtol=0.0), (
        float(jnp.max(jnp.abs(out - ref))))

    # Also exercise the padded / non-multiple-of-8 batch path.
    key, kx2 = jax.random.split(key)
    x2 = jax.random.normal(kx2, (37, LATENT_FEATURES), dtype=jnp.float32)
    out2 = jax.block_until_ready(decoder_forward(x2, params))
    ref2 = reference_forward(x2, params)
    assert out2.shape == (37, OUT_FEATURES), out2.shape
    assert jnp.allclose(out2, ref2, atol=3e-2, rtol=0.0), (
        float(jnp.max(jnp.abs(out2 - ref2))))

    print("KERNEL_OK")
</pallas_src>

<mosaic_0001>
module attributes {stable_mosaic.version = 11 : i64} {
  func.func @decoder_kernel(%arg0: i32, %arg1: memref<1x40xbf16, #tpu.memory_space<vmem>>, %arg2: memref<40x256xbf16, #tpu.memory_space<vmem>>, %arg3: memref<2x256x256xbf16, #tpu.memory_space<vmem>>, %arg4: memref<256x128xbf16, #tpu.memory_space<vmem>>, %arg5: memref<4x256xf32, #tpu.memory_space<vmem>>, %arg6: memref<1x128xf32, #tpu.memory_space<vmem>>) attributes {dimension_semantics = [#tpu.dimension_semantics<parallel>], iteration_bounds = array<i64: 1>, scalar_prefetch = 0 : i64, scratch_operands = 0 : i64, tpu.core_type = #tpu.core_type<tc>, window_params = [{transform_indices = @transform_0, window_bounds = array<i64: 1, 40>}, {pipeline_mode = #tpu.pipeline_mode<synchronous>, transform_indices = @transform_1, window_bounds = array<i64: 40, 256>}, {pipeline_mode = #tpu.pipeline_mode<synchronous>, transform_indices = @transform_2, window_bounds = array<i64: 2, 256, 256>}, {pipeline_mode = #tpu.pipeline_mode<synchronous>, transform_indices = @transform_3, window_bounds = array<i64: 256, 128>}, {pipeline_mode = #tpu.pipeline_mode<synchronous>, transform_indices = @transform_4, window_bounds = array<i64: 4, 256>}, {transform_indices = @transform_5, window_bounds = array<i64: 1, 128>}]} {
    %c0 = arith.constant 0 : index
    %c0_0 = arith.constant 0 : index
    %0 = vector.load %arg1[%c0, %c0_0] : memref<1x40xbf16, #tpu.memory_space<vmem>>, vector<1x40xbf16>
    %c0_1 = arith.constant 0 : index
    %c0_2 = arith.constant 0 : index
    %1 = vector.load %arg2[%c0_1, %c0_2] : memref<40x256xbf16, #tpu.memory_space<vmem>>, vector<40x256xbf16>
    %cst = arith.constant dense<0.000000e+00> : vector<1x256xf32>
    %2 = tpu.matmul %0, %1, %cst {dimension_numbers = #tpu.dot_dimension_numbers<[1], [0], [0], [1], [0, 0, 1, 1], [], []>} : vector<1x40xbf16>, vector<40x256xbf16>, vector<1x256xf32> -> vector<1x256xf32>
    %c0_3 = arith.constant 0 : index
    %c0_4 = arith.constant 0 : index
    %3 = vector.load %arg5[%c0_3, %c0_4] : memref<4x256xf32, #tpu.memory_space<vmem>>, vector<1x256xf32>
    %4 = arith.addf %2, %3 : vector<1x256xf32>
    %cst_5 = arith.constant 0.000000e+00 : f32
    %5 = vector.broadcast %cst_5 : f32 to vector<1x256xf32>
    %6 = arith.maximumf %4, %5 : vector<1x256xf32>
    %7 = arith.truncf %6 : vector<1x256xf32> to vector<1x256xbf16>
    %c0_6 = arith.constant 0 : index
    %c0_7 = arith.constant 0 : index
    %c0_8 = arith.constant 0 : index
    %8 = vector.load %arg3[%c0_6, %c0_7, %c0_8] : memref<2x256x256xbf16, #tpu.memory_space<vmem>>, vector<1x256x256xbf16>
    %9 = vector.shape_cast %8 : vector<1x256x256xbf16> to vector<256x256xbf16>
    %cst_9 = arith.constant dense<0.000000e+00> : vector<1x256xf32>
    %10 = tpu.matmul %7, %9, %cst_9 {dimension_numbers = #tpu.dot_dimension_numbers<[1], [0], [0], [1], [0, 0, 1, 1], [], []>} : vector<1x256xbf16>, vector<256x256xbf16>, vector<1x256xf32> -> vector<1x256xf32>
    %c1 = arith.constant 1 : index
    %c0_10 = arith.constant 0 : index
    %11 = vector.load %arg5[%c1, %c0_10] : memref<4x256xf32, #tpu.memory_space<vmem>>, vector<1x256xf32>
    %12 = arith.addf %10, %11 : vector<1x256xf32>
    %cst_11 = arith.constant 0.000000e+00 : f32
    %13 = vector.broadcast %cst_11 : f32 to vector<1x256xf32>
    %14 = arith.maximumf %12, %13 : vector<1x256xf32>
    %15 = arith.truncf %14 : vector<1x256xf32> to vector<1x256xbf16>
    %c1_12 = arith.constant 1 : index
    %c0_13 = arith.constant 0 : index
    %c0_14 = arith.constant 0 : index
    %16 = vector.load %arg3[%c1_12, %c0_13, %c0_14] : memref<2x256x256xbf16, #tpu.memory_space<vmem>>, vector<1x256x256xbf16>
    %17 = vector.shape_cast %16 : vector<1x256x256xbf16> to vector<256x256xbf16>
    %cst_15 = arith.constant dense<0.000000e+00> : vector<1x256xf32>
    %18 = tpu.matmul %15, %17, %cst_15 {dimension_numbers = #tpu.dot_dimension_numbers<[1], [0], [0], [1], [0, 0, 1, 1], [], []>} : vector<1x256xbf16>, vector<256x256xbf16>, vector<1x256xf32> -> vector<1x256xf32>
    %c2 = arith.constant 2 : index
    %c0_16 = arith.constant 0 : index
    %19 = vector.load %arg5[%c2, %c0_16] : memref<4x256xf32, #tpu.memory_space<vmem>>, vector<1x256xf32>
    %20 = arith.addf %18, %19 : vector<1x256xf32>
    %cst_17 = arith.constant 0.000000e+00 : f32
    %21 = vector.broadcast %cst_17 : f32 to vector<1x256xf32>
    %22 = arith.maximumf %20, %21 : vector<1x256xf32>
    %23 = arith.truncf %22 : vector<1x256xf32> to vector<1x256xbf16>
    %c0_18 = arith.constant 0 : index
    %c0_19 = arith.constant 0 : index
    %24 = vector.load %arg4[%c0_18, %c0_19] : memref<256x128xbf16, #tpu.memory_space<vmem>>, vector<256x128xbf16>
    %cst_20 = arith.constant dense<0.000000e+00> : vector<1x128xf32>
    %25 = tpu.matmul %23, %24, %cst_20 {dimension_numbers = #tpu.dot_dimension_numbers<[1], [0], [0], [1], [0, 0, 1, 1], [], []>} : vector<1x256xbf16>, vector<256x128xbf16>, vector<1x128xf32> -> vector<1x128xf32>
    %c3 = arith.constant 3 : index
    %c0_21 = arith.constant 0 : index
    %26 = vector.load %arg5[%c3, %c0_21] : memref<4x256xf32, #tpu.memory_space<vmem>>, vector<1x128xf32>
    %27 = arith.addf %25, %26 : vector<1x128xf32>
    %28 = math.tanh %27 : vector<1x128xf32>
    %c0_22 = arith.constant 0 : index
    %c0_23 = arith.constant 0 : index
    %29 = vector.load %arg6[%c0_22, %c0_23] : memref<1x128xf32, #tpu.memory_space<vmem>>, vector<1x128xf32>
    tpu.vector_store %arg6[%c0_22, %c0_23], %28 {strides = array<i32>} : memref<1x128xf32, #tpu.memory_space<vmem>>, vector<1x128xf32>,
    return
  }
  func.func @transform_0(%arg0: i32) -> (i32, i32) {
    %c0_i32 = arith.constant 0 : i32
    %c0_i32_0 = arith.constant 0 : i32
    return %arg0, %c0_i32 : i32, i32
  }
  func.func @transform_1(%arg0: i32) -> (i32, i32) {
    %c0_i32 = arith.constant 0 : i32
    %c0_i32_0 = arith.constant 0 : i32
    %c0_i32_1 = arith.constant 0 : i32
    return %c0_i32, %c0_i32_0 : i32, i32
  }
  func.func @transform_2(%arg0: i32) -> (i32, i32, i32) {
    %c0_i32 = arith.constant 0 : i32
    %c0_i32_0 = arith.constant 0 : i32
    %c0_i32_1 = arith.constant 0 : i32
    %c0_i32_2 = arith.constant 0 : i32
    return %c0_i32, %c0_i32_0, %c0_i32_1 : i32, i32, i32
  }
  func.func @transform_3(%arg0: i32) -> (i32, i32) {
    %c0_i32 = arith.constant 0 : i32
    %c0_i32_0 = arith.constant 0 : i32
    %c0_i32_1 = arith.constant 0 : i32
    return %c0_i32, %c0_i32_0 : i32, i32
  }
  func.func @transform_4(%arg0: i32) -> (i32, i32) {
    %c0_i32 = arith.constant 0 : i32
    %c0_i32_0 = arith.constant 0 : i32
    %c0_i32_1 = arith.constant 0 : i32
    return %c0_i32, %c0_i32_0 : i32, i32
  }
  func.func @transform_5(%arg0: i32) -> (i32, i32) {
    %c0_i32 = arith.constant 0 : i32
    %c0_i32_0 = arith.constant 0 : i32
    return %arg0, %c0_i32 : i32, i32
  }
}

</mosaic_0001>

<bundles_post_ra>
// kernel: tpu_custom_call.1
= control target key start
LH: loop header
LB: loop body
LE: loop exit
PB: predicated region body
PF: predicated region fallthrough
CT: control target
= control target key end

     0   :  { %10 = vsyncpa [#allocation3], 0  ;;  %s1320_s0 = inlined_call_operand.hbm [shape: bf16[1,40], index: 0, kind: input, shape index: {}]   ;;  %s1321_s1 = inlined_call_operand.hbm [shape: bf16[40,256], index: 1, kind: input, shape index: {}]   ;;  %s1322_s2 = inlined_call_operand.hbm [shape: bf16[2,256,256], index: 2, kind: input, shape index: {}]   ;;  %s1323_s3 = inlined_call_operand.hbm [shape: bf16[256,128], index: 3, kind: input, shape index: {}]   ;;  %s1324_s4 = inlined_call_operand.hbm [shape: f32[4,256], index: 4, kind: input, shape index: {}]   ;;  %s1325_s5 = inlined_call_operand.hbm [shape: f32[1,128], index: 5, kind: output, shape index: {}]  }
   0x1   :  { %11 = vsyncpa [#allocation6], 0 }
   0x2   :  { %12 = vsyncpa [#allocation9], 0 }
   0x3   :  { %13 = vsyncpa [#allocation4], 0  ;;  %s1245_s18 = smov [#allocation5]  }
   0x4   :  { %s29_s19 = sshll.u32 %s1245_s18, 4  ;;  %s30_s19 = int_to_ptr.vmem [resolvable:$true] %s29_s19 }
   0x5   :  { %s1125_s20 = scalar_lea.vmem %s30_s19, 640  ;;  %p1130_p1 = scmp.lt.s32.totalorder %s30_s19, %s30_s19 }
   0x6   :  { %p1126_p0 = scmp.ne.s32.totalorder %s30_s19, %s1125_s20  ;;  %p1131_p2 = scmp.lt.s32.totalorder %s1125_s20, %s1125_s20 }
   0x8   :  { %p1132_p3 = por %p1131_p2, %p1130_p1 }
   0xa   :  { %p1133_p4 = pnand %p1132_p3, %p1126_p0 }
   0xc   :  { %1136 = shalt.err (!%p1133_p4)
}
   0xd   :  { %s1246_s21 = smov 128   ;;  %s1247_s22 = smov 8  }
   0xe   :  { %35 = dma.hbm_to_vmem [thread:$0]  %s1321_s1, 640, %s30_s19, [#allocation6], %s1246_s21, %s1246_s21, %s1247_s22  }
   0xf   :  { %s1248_s25 = smov [#allocation8]  }
  0x10   :  { %s53_s26 = sshll.u32 %s1248_s25, 4  ;;  %s54_s26 = int_to_ptr.vmem [resolvable:$true] %s53_s26 }
  0x11   :  { %s1145_s27 = scalar_lea.vmem %s54_s26, 2048  ;;  %p1150_p6 = scmp.lt.s32.totalorder %s54_s26, %s54_s26 }
  0x12   :  { %p1146_p5 = scmp.ne.s32.totalorder %s54_s26, %s1145_s27  ;;  %p1151_p7 = scmp.lt.s32.totalorder %s1145_s27, %s1145_s27 }
  0x14   :  { %p1152_p8 = por %p1151_p7, %p1150_p6 }
  0x16   :  { %p1153_p9 = pnand %p1152_p8, %p1146_p5 }
  0x18   :  { %1156 = shalt.err (!%p1153_p9)
}
  0x19   :  { %s1249_s28 = smov 64   ;;  %s1250_s29 = smov 4  }
  0x1a   :  { %59 = dma.hbm_to_vmem [thread:$0]  %s1323_s3, 2048, %s54_s26, [#allocation9], %s1249_s28, %s1249_s28, %s1250_s29  }
  0x1b   :  { %s1251_s7 = smov [#allocation2]   ;;  %s1252_s9 = smov [#allocation7]  }
  0x1c   :  { %s20_s8 = sshll.u32 %s1251_s7, 4  ;;  %s41_s1 = sshll.u32 %s1252_s9, 4  ;;  %s21_s8 = int_to_ptr.vmem [resolvable:$true] %s20_s8  ;;  %s42_s1 = int_to_ptr.vmem [resolvable:$true] %s41_s1 }
  0x1d   :  { %s1165_s10 = scalar_lea.vmem %s21_s8, 16  ;;  %s1169_s11 = scalar_lea.vmem %s21_s8, 32 }
  0x1e   :  { %p1166_p10 = scmp.ne.s32.totalorder %s21_s8, %s1165_s10  ;;  %p1170_p11 = scmp.lt.s32.totalorder %s21_s8, %s21_s8 }
  0x1f   :  { %p1171_p12 = scmp.lt.s32.totalorder %s1169_s11, %s1165_s10 }
  0x21   :  { %p1172_p13 = por %p1171_p12, %p1170_p11 }
  0x23   :  { %p1173_p0 = pnand %p1172_p13, %p1166_p10 }
  0x25   :  { %1176 = shalt.err (!%p1173_p0)
}
  0x26   :  { %23 = dma.hbm_to_vmem [thread:$0]  %s1320_s0, 16, %s21_s8, [#allocation3]  }
  0x27   :  { %s1185_s14 = scalar_lea.vmem %s42_s1, 8192  ;;  %p1190_p2 = scmp.lt.s32.totalorder %s42_s1, %s42_s1 }
  0x28   :  { %p1186_p1 = scmp.ne.s32.totalorder %s42_s1, %s1185_s14  ;;  %p1191_p3 = scmp.lt.s32.totalorder %s1185_s14, %s1185_s14 }
  0x2a   :  { %p1192_p4 = por %p1191_p3, %p1190_p2 }
  0x2c   :  { %p1193_p5 = pnand %p1192_p4, %p1186_p1 }
  0x2e   :  { %1196 = shalt.err (!%p1193_p5)
}
  0x2f   :  { %47 = dma.hbm_to_vmem [thread:$0]  %s1322_s2, 8192, %s42_s1, [#allocation6], %s1246_s21, %s1246_s21, %s1247_s22  }
  0x30   :  { %s1253_s16 = smov [#allocation10]  }
  0x31   :  { %s66_s17 = sshll.u32 %s1253_s16, 4  ;;  %s67_s17 = int_to_ptr.vmem [resolvable:$true] %s66_s17 }
  0x32   :  { %s1205_s18 = scalar_lea.vmem %s67_s17, 128  ;;  %p1210_p7 = scmp.lt.s32.totalorder %s67_s17, %s67_s17 }
  0x33   :  { %p1206_p6 = scmp.ne.s32.totalorder %s67_s17, %s1205_s18  ;;  %p1211_p8 = scmp.lt.s32.totalorder %s1205_s18, %s1205_s18 }
  0x35   :  { %p1212_p9 = por %p1211_p8, %p1210_p7 }
  0x37   :  { %p1213_p10 = pnand %p1212_p9, %p1206_p6 }
  0x39   :  { %1216 = shalt.err (!%p1213_p10)
}
  0x3a   :  { %69 = dma.hbm_to_vmem [thread:$0]  %s1324_s4, 128, %s67_s17, [#allocation9]  }
  0x3b   :  { %1237 = dma.done.wait [#allocation3], 16  }
  0x3c   :  { %1238 = vsyncadd [#allocation3], 4294967280 }
  0x3d   :  { %1239 = dma.done.wait [#allocation6], 8832  }
  0x3e   :  { %1240 = vsyncadd [#allocation6], 4294958464 }
  0x3f   :  { %1241 = dma.done.wait [#allocation9], 2176  }
  0x40   :  { %1242 = vsyncadd [#allocation9], 4294965120  ;;  %v1254_v0 = vmov 0   ;;  %v91_v1 = vld [vmem:[#allocation5 + $0x20] sm:$0xff]  ;;  %vm133_vm0 = vcmask 1043456   ;;  %vm129_vm1 = vcmask 326656  }
  0x41   :  { %172 = vmatprep.mubr.bf16.mxu0 %v1254_v0  ;;  %v879_v2 = vcombine.high %v91_v1, %v91_v1  ;;  %v878_v3 = vcombine.low %v91_v1, %v91_v1  ;;  %v997_v4 = vld [vmem:[#allocation5 + $0x14] ss:$8 sps:$4 sm:$0xff]   ;;  %v999_v6 = vld [vmem:[#allocation5 + $0x10] ss:$8 sps:$4 sm:$0xff]   ;;  %v1000_v9 = vld [vmem:[#allocation5 + $0x4] ss:$8 sps:$4 sm:$0xff]  }
  0x42   :  { %v1003_v7 = vld [vmem:[#allocation7 + $0x74] ss:$8 sps:$4 sm:$0xff]   ;;  %v1005_v8 = vld [vmem:[#allocation7 + $0x70] ss:$8 sps:$4 sm:$0xff]   ;;  %v1006_v10 = vld [vmem:[#allocation7 + $0x64] ss:$8 sps:$4 sm:$0xff]  }
  0x43   :  { %880 = vmatprep.subr.msk.bf16.mxu0 %vm133_vm0, %v879_v2  ;;  %v135_v5 = vsel %vm133_vm0, %v878_v3, 0  ;;  %390 = vmatprep.subr.bf16.mxu1 %v1003_v7  ;;  %v1008_v11 = vld [vmem:[#allocation7 + $0x60] ss:$8 sps:$4 sm:$0xff]   ;;  %v1009_v13 = vld [vmem:[#allocation7 + $0x54] ss:$8 sps:$4 sm:$0xff]   ;;  %s1255_s2 = smov [#allocation11]  }
  0x44   :  { %151 = vmatpush1.bf16.msra.mxu0 %v135_v5  ;;  %391 = vmatpush1.bf16.msra.mxu1 %v1005_v8  ;;  %v1002_v12 = vld [vmem:[#allocation5] ss:$8 sps:$4 sm:$0xff]   ;;  %v86_v15 = vld [vmem:[#allocation2] sm:$0x1]  ;;  %v1012_v16 = vld [vmem:[#allocation7 + $0x44] ss:$8 sps:$4 sm:$0xff]  }
  0x45   :  { %152 = vmatprep.subr.bf16.mxu0 %v997_v4  ;;  %392 = vmatprep.subr.bf16.mxu1 %v1006_v10  ;;  %v1011_v14 = vld [vmem:[#allocation7 + $0x50] ss:$8 sps:$4 sm:$0xff]   ;;  %v1014_v17 = vld [vmem:[#allocation7 + $0x40] ss:$8 sps:$4 sm:$0xff]   ;;  %v1015_v18 = vld [vmem:[#allocation7 + $0x34] ss:$8 sps:$4 sm:$0xff]  }
  0x46   :  { %v1017_v19 = vld [vmem:[#allocation7 + $0x30] ss:$8 sps:$4 sm:$0xff]   ;;  %v1018_v20 = vld [vmem:[#allocation7 + $0x24] ss:$8 sps:$4 sm:$0xff]   ;;  %v1020_v21 = vld [vmem:[#allocation7 + $0x20] ss:$8 sps:$4 sm:$0xff]  }
  0x47   :  { %v1021_v22 = vld [vmem:[#allocation7 + $0x14] ss:$8 sps:$4 sm:$0xff]   ;;  %v1023_v23 = vld [vmem:[#allocation7 + $0x10] ss:$8 sps:$4 sm:$0xff]   ;;  %v1024_v24 = vld [vmem:[#allocation7 + $0x4] ss:$8 sps:$4 sm:$0xff]  }
  0x48   :  { %153 = vmatpush1.bf16.msra.mxu0 %v999_v6  ;;  %393 = vmatpush1.bf16.msra.mxu1 %v1008_v11  ;;  %v1026_v25 = vld [vmem:[#allocation7] ss:$8 sps:$4 sm:$0xff]   ;;  %v1027_v26 = vld [vmem:[#allocation7 + $0xf4] ss:$8 sps:$4 sm:$0xff]   ;;  %v1029_v27 = vld [vmem:[#allocation7 + $0xf0] ss:$8 sps:$4 sm:$0xff]   ;;  %v119_v6 = vlaneseq }
  0x49   :  { %154 = vmatprep.subr.bf16.mxu0 %v1000_v9  ;;  %394 = vmatprep.subr.bf16.mxu1 %v1009_v13  ;;  %v1030_v28 = vld [vmem:[#allocation7 + $0xe4] ss:$8 sps:$4 sm:$0xff]   ;;  %v1032_v29 = vld [vmem:[#allocation7 + $0xe0] ss:$8 sps:$4 sm:$0xff]   ;;  %v1033_v30 = vld [vmem:[#allocation7 + $0xd4] ss:$8 sps:$4 sm:$0xff]  }
  0x4a   :  { %v1035_v31 = vld [vmem:[#allocation7 + $0xd0] ss:$8 sps:$4 sm:$0xff]   ;;  %v1036_v32 = vld [vmem:[#allocation7 + $0xc4] ss:$8 sps:$4 sm:$0xff]   ;;  %v1038_v33 = vld [vmem:[#allocation7 + $0xc0] ss:$8 sps:$4 sm:$0xff]  }
  0x4b   :  { %v1039_v34 = vld [vmem:[#allocation7 + $0xb4] ss:$8 sps:$4 sm:$0xff]   ;;  %v1041_v35 = vld [vmem:[#allocation7 + $0xb0] ss:$8 sps:$4 sm:$0xff]   ;;  %v1042_v36 = vld [vmem:[#allocation7 + $0xa4] ss:$8 sps:$4 sm:$0xff]  }
  0x4c   :  { %155 = vmatpush1.bf16.msra.mxu0 %v1002_v12  ;;  %395 = vmatpush1.bf16.msra.mxu1 %v1011_v14  ;;  %v1044_v37 = vld [vmem:[#allocation7 + $0xa0] ss:$8 sps:$4 sm:$0xff]   ;;  %v1045_v38 = vld [vmem:[#allocation7 + $0x94] ss:$8 sps:$4 sm:$0xff]   ;;  %v1047_v39 = vld [vmem:[#allocation7 + $0x90] ss:$8 sps:$4 sm:$0xff]  }
  0x4d   :  { %396 = vmatprep.subr.bf16.mxu1 %v1012_v16  ;;  %v1048_v40 = vld [vmem:[#allocation7 + $0x84] ss:$8 sps:$4 sm:$0xff]   ;;  %v1050_v41 = vld [vmem:[#allocation7 + $0x80] ss:$8 sps:$4 sm:$0xff]   ;;  %v1051_v42 = vld [vmem:[#allocation7 + $0x170] ss:$8 sps:$4 sm:$0xff]  }
  0x4e   :  { %v1053_v43 = vld [vmem:[#allocation7 + $0x174] ss:$8 sps:$4 sm:$0xff]   ;;  %v1056_v44 = vld [vmem:[#allocation7 + $0x164] ss:$8 sps:$4 sm:$0xff]   ;;  %v1054_v45 = vld [vmem:[#allocation7 + $0x160] ss:$8 sps:$4 sm:$0xff]  }
  0x4f   :  { %881 = vmatmul.mubr.msk.bf16.vlgmr.msra.gmra.mxu0 %vm129_vm1, %v86_v15  ;;  %641 = vmatprep.subr.bf16.mxu0 %v1053_v43  ;;  %v1059_v46 = vld [vmem:[#allocation7 + $0x154] ss:$8 sps:$4 sm:$0xff]   ;;  %v1057_v47 = vld [vmem:[#allocation7 + $0x150] ss:$8 sps:$4 sm:$0xff]   ;;  %v1062_v48 = vld [vmem:[#allocation7 + $0x144] ss:$8 sps:$4 sm:$0xff]  }
  0x50   :  { %397 = vmatpush1.bf16.msra.mxu1 %v1014_v17  ;;  %642 = vmatpush1.bf16.msra.mxu0 %v1051_v42  ;;  %v1060_v49 = vld [vmem:[#allocation7 + $0x140] ss:$8 sps:$4 sm:$0xff]   ;;  %v1065_v50 = vld [vmem:[#allocation7 + $0x134] ss:$8 sps:$4 sm:$0xff]   ;;  %v1063_v51 = vld [vmem:[#allocation7 + $0x130] ss:$8 sps:$4 sm:$0xff]  }
  0x51   :  { %398 = vmatprep.subr.bf16.mxu1 %v1015_v18  ;;  %643 = vmatprep.subr.bf16.mxu0 %v1056_v44  ;;  %v1068_v52 = vld [vmem:[#allocation7 + $0x124] ss:$8 sps:$4 sm:$0xff]   ;;  %v1066_v53 = vld [vmem:[#allocation7 + $0x120] ss:$8 sps:$4 sm:$0xff]   ;;  %v1071_v54 = vld [vmem:[#allocation7 + $0x114] ss:$8 sps:$4 sm:$0xff]  }
  0x52   :  { %v1069_v55 = vld [vmem:[#allocation7 + $0x110] ss:$8 sps:$4 sm:$0xff]   ;;  %v1074_v56 = vld [vmem:[#allocation7 + $0x104] ss:$8 sps:$4 sm:$0xff]   ;;  %v1072_v57 = vld [vmem:[#allocation7 + $0x100] ss:$8 sps:$4 sm:$0xff]  }
  0x53   :  { %v1077_v58 = vld [vmem:[#allocation7 + $0x1f4] ss:$8 sps:$4 sm:$0xff]   ;;  %v1075_v59 = vld [vmem:[#allocation7 + $0x1f0] ss:$8 sps:$4 sm:$0xff]   ;;  %v1080_v60 = vld [vmem:[#allocation7 + $0x1e4] ss:$8 sps:$4 sm:$0xff]  }
  0x54   :  { %399 = vmatpush1.bf16.msra.mxu1 %v1017_v19  ;;  %644 = vmatpush1.bf16.msra.mxu0 %v1054_v45  ;;  %v1078_v61 = vld [vmem:[#allocation7 + $0x1e0] ss:$8 sps:$4 sm:$0xff]   ;;  %v1083_v62 = vld [vmem:[#allocation7 + $0x1d4] ss:$8 sps:$4 sm:$0xff]   ;;  %v1081_v63 = vld [vmem:[#allocation7 + $0x1d0] ss:$8 sps:$4 sm:$0xff]  }
  0x55   :  { %400 = vmatprep.subr.bf16.mxu1 %v1018_v20  ;;  %645 = vmatprep.subr.bf16.mxu0 %v1059_v46  ;;  %v1086_v0 = vld [vmem:[#allocation7 + $0x1c4] ss:$8 sps:$4 sm:$0xff]   ;;  %v1084_v1 = vld [vmem:[#allocation7 + $0x1c0] ss:$8 sps:$4 sm:$0xff]   ;;  %v1089_v2 = vld [vmem:[#allocation7 + $0x1b4] ss:$8 sps:$4 sm:$0xff]  }
  0x56   :  { %v1087_v3 = vld [vmem:[#allocation7 + $0x1b0] ss:$8 sps:$4 sm:$0xff]   ;;  %v1092_v4 = vld [vmem:[#allocation7 + $0x1a4] ss:$8 sps:$4 sm:$0xff]   ;;  %v1090_v5 = vld [vmem:[#allocation7 + $0x1a0] ss:$8 sps:$4 sm:$0xff]  }
  0x57   :  { %v120_v7 = vshrl.u32 %v119_v6, 7  ;;  %v92_v9 = vld [vmem:[#allocation10] ss:$4 sm:$0x3]  ;;  %v718_v6 = vld [vmem:[#allocation10 + $0x3] sm:$0x1] }
  0x58   :  { %401 = vmatpush1.bf16.msra.mxu1 %v1020_v21  ;;  %646 = vmatpush1.bf16.msra.mxu0 %v1057_v47  ;;  %s863_s4 = sshll.u32 %s1255_s2, 4  ;;  %s864_s4 = int_to_ptr.vmem [resolvable:$true] %s863_s4 }
  0x59   :  { %402 = vmatprep.subr.bf16.mxu1 %v1021_v22  ;;  %647 = vmatprep.subr.bf16.mxu0 %v1062_v48  ;;  %v1307_v8 = vsub.s32 0, %v120_v7  ;;  %v1309_v10 = vsub.s32 1, %v120_v7  ;;  %s1217_s20 = scalar_lea.vmem %s864_s4, 16  ;;  %s1221_s21 = scalar_lea.vmem %s864_s4, 32 }
  0x5a   :  { %p1218_p11 = scmp.ne.s32.totalorder %s864_s4, %s1217_s20  ;;  %p1222_p12 = scmp.lt.s32.totalorder %s864_s4, %s864_s4 }
  0x5b   :  { %v122_v11 = vrot.slane %v92_v9, %v1307_v8  ;;  %v126_v12 = vrot.slane %v92_v9, %v1309_v10  ;;  %p1223_p13 = scmp.lt.s32.totalorder %s1221_s21, %s1217_s20 }
  0x5c   :  { %403 = vmatpush1.bf16.msra.mxu1 %v1023_v23  ;;  %648 = vmatpush1.bf16.msra.mxu0 %v1060_v49  ;;  %v1095_v23 = vld [vmem:[#allocation7 + $0x194] ss:$8 sps:$4 sm:$0xff]  }
  0x5d   :  { %404 = vmatprep.subr.bf16.mxu1 %v1024_v24  ;;  %649 = vmatprep.subr.bf16.mxu0 %v1065_v50  ;;  %v1093_v24 = vld [vmem:[#allocation7 + $0x190] ss:$8 sps:$4 sm:$0xff]   ;;  %p1224_p0 = por %p1223_p13, %p1222_p12 }
  0x5f   :  { %p1225_p1 = pnand %p1224_p0, %p1218_p11 }
  0x60   :  { %405 = vmatpush1.bf16.msra.mxu1 %v1026_v25  ;;  %650 = vmatpush1.bf16.msra.mxu0 %v1063_v51  ;;  %v1098_v25 = vld [vmem:[#allocation7 + $0x184] ss:$8 sps:$4 sm:$0xff]  }
  0x61   :  { %406 = vmatprep.subr.bf16.mxu1 %v1027_v26  ;;  %651 = vmatprep.subr.bf16.mxu0 %v1068_v52  ;;  %v1096_v26 = vld [vmem:[#allocation7 + $0x180] ss:$8 sps:$4 sm:$0xff]  }
  0x62   :  { %v1111_v52 = vld [vmem:[#allocation8 + $0x48] sm:$0xff]  }
  0x64   :  { %407 = vmatpush2.bf16.msra.mxu1 %v1029_v27  ;;  %652 = vmatpush1.bf16.msra.mxu0 %v1066_v53  ;;  %v1099_v27 = vld [vmem:[#allocation8 + $0x78] sm:$0xff]   ;;  %v1112_v53 = vld [vmem:[#allocation8 + $0x8] sm:$0xff]  }
  0x65   :  { %408 = vmatprep.subr.bf16.mxu1 %v1030_v28  ;;  %653 = vmatprep.subr.bf16.mxu0 %v1071_v54  ;;  %v1100_v28 = vld [vmem:[#allocation8 + $0x38] sm:$0xff]   ;;  %v1113_v54 = vld [vmem:[#allocation8 + $0x40] sm:$0xff]  }
  0x68   :  { %409 = vmatpush2.bf16.msra.mxu1 %v1032_v29  ;;  %654 = vmatpush1.bf16.msra.mxu0 %v1069_v55  ;;  %v1101_v29 = vld [vmem:[#allocation8 + $0x70] sm:$0xff]   ;;  %v1114_v55 = vld [vmem:[#allocation8] sm:$0xff]  }
  0x69   :  { %410 = vmatprep.subr.bf16.mxu1 %v1033_v30  ;;  %655 = vmatprep.subr.bf16.mxu0 %v1074_v56  ;;  %v1102_v30 = vld [vmem:[#allocation8 + $0x30] sm:$0xff]   ;;  %v469_v56 = vld [vmem:[#allocation10 + $0x2] ss:$4 sm:$0x3] }
  0x6c   :  { %411 = vmatpush2.bf16.msra.mxu1 %v1035_v31  ;;  %656 = vmatpush1.bf16.msra.mxu0 %v1072_v57  ;;  %v1103_v31 = vld [vmem:[#allocation8 + $0x68] sm:$0xff]   ;;  %v634_v57 = vrot.slane %v469_v56, %v1307_v8 }
  0x6d   :  { %412 = vmatprep.subr.bf16.mxu1 %v1036_v32  ;;  %657 = vmatprep.subr.bf16.mxu0 %v1077_v58  ;;  %v1104_v32 = vld [vmem:[#allocation8 + $0x28] sm:$0xff]   ;;  %v638_v58 = vrot.slane %v469_v56, %v1309_v10 }
  0x70   :  { %413 = vmatpush2.bf16.msra.mxu1 %v1038_v33  ;;  %658 = vmatpush2.bf16.msra.mxu0 %v1075_v59  ;;  %v1105_v33 = vld [vmem:[#allocation8 + $0x60] sm:$0xff]  }
  0x71   :  { %414 = vmatprep.subr.bf16.mxu1 %v1039_v34  ;;  %659 = vmatprep.subr.bf16.mxu0 %v1080_v60  ;;  %v1106_v34 = vld [vmem:[#allocation8 + $0x20] sm:$0xff]  }
  0x74   :  { %415 = vmatpush2.bf16.msra.mxu1 %v1041_v35  ;;  %660 = vmatpush2.bf16.msra.mxu0 %v1078_v61  ;;  %v1107_v35 = vld [vmem:[#allocation8 + $0x58] sm:$0xff]  }
  0x75   :  { %416 = vmatprep.subr.bf16.mxu1 %v1042_v36  ;;  %661 = vmatprep.subr.bf16.mxu0 %v1083_v62  ;;  %v1108_v36 = vld [vmem:[#allocation8 + $0x18] sm:$0xff]  }
  0x78   :  { %417 = vmatpush2.bf16.msra.mxu1 %v1044_v37  ;;  %662 = vmatpush2.bf16.msra.mxu0 %v1081_v63  ;;  %v1109_v37 = vld [vmem:[#allocation8 + $0x50] sm:$0xff]  }
  0x79   :  { %418 = vmatprep.subr.bf16.mxu1 %v1045_v38  ;;  %663 = vmatprep.subr.bf16.mxu0 %v1086_v0  ;;  %v1110_v38 = vld [vmem:[#allocation8 + $0x10] sm:$0xff]  }
  0x7c   :  { %419 = vmatpush2.bf16.msra.mxu1 %v1047_v39  ;;  %664 = vmatpush2.bf16.msra.mxu0 %v1084_v1  ;;  %v218_v39 = vld [vmem:[#allocation10 + $0x1] ss:$4 sm:$0x3] }
  0x7d   :  { %420 = vmatprep.subr.bf16.mxu1 %v1048_v40  ;;  %665 = vmatprep.subr.bf16.mxu0 %v1089_v2  ;;  %v383_v40 = vrot.slane %v218_v39, %v1307_v8 }
  0x80   :  { %421 = vmatpush2.bf16.msra.mxu1 %v1050_v41  ;;  %666 = vmatpush2.bf16.msra.mxu0 %v1087_v3  ;;  %v387_v41 = vrot.slane %v218_v39, %v1309_v10 }
  0x81   :  { %667 = vmatprep.subr.bf16.mxu0 %v1092_v4  ;;  %962 = vmatprep.subr.bf16.mxu1 %v1099_v27 }
  0x84   :  { %668 = vmatpush2.bf16.msra.mxu0 %v1090_v5 }
  0x85   :  { %669 = vmatprep.subr.bf16.mxu0 %v1095_v23 }
  0x88   :  { %670 = vmatpush2.bf16.msra.mxu0 %v1093_v24 }
  0x89   :  { %671 = vmatprep.subr.bf16.mxu0 %v1098_v25 }
  0x8c   :  { %672 = vmatpush2.bf16.msra.mxu0 %v1096_v26 }
 0x10f   :  { %v174_v13 = vpop.f32.mrf.mxu0 }
 0x110   :  { %v175_v14 = vadd.f32 %v174_v13, %v122_v11 }
 0x111   :  { %v176_v15 = vpop.f32.mrf.mxu0 }
 0x112   :  { %v177_v16 = vadd.f32 %v176_v15, %v126_v12  ;;  %v181_v17 = vmax.f32 %v175_v14, 0.0 }
 0x113   :  { %v178_v18 = vpop.f32.mrf.mxu0 }
 0x114   :  { %v182_v19 = vmax.f32 %v177_v16, 0.0  ;;  %v183_v22 = vpack.c.bf16 %v181_v17, %v181_v17 }
 0x115   :  { %v179_v20 = vpop.f32.mrf.mxu0 }
 0x116   :  { %v184_v21 = vpack.c.bf16 %v182_v19, %v182_v19 }
 0x118   :  { %422 = vmatprep.mubr.bf16.mxu1 %v184_v21 }
 0x119   :  { %423 = vmatmul.mubr.bf16.vlgmr.msra.gmra.mxu1 %v183_v22 }
 0x11a   :  { %963 = vmatpush3.bf16.msra.mxu1 %v1100_v28 }
 0x11b   :  { %964 = vmatprep.subr.bf16.mxu1 %v1101_v29 }
 0x11e   :  { %965 = vmatpush3.bf16.msra.mxu1 %v1102_v30 }
 0x11f   :  { %966 = vmatprep.subr.bf16.mxu1 %v1103_v31 }
 0x122   :  { %967 = vmatpush3.bf16.msra.mxu1 %v1104_v32 }
 0x123   :  { %968 = vmatprep.subr.bf16.mxu1 %v1105_v33 }
 0x126   :  { %969 = vmatpush3.bf16.msra.mxu1 %v1106_v34 }
 0x127   :  { %970 = vmatprep.subr.bf16.mxu1 %v1107_v35 }
 0x12a   :  { %971 = vmatpush3.bf16.msra.mxu1 %v1108_v36 }
 0x12b   :  { %972 = vmatprep.subr.bf16.mxu1 %v1109_v37 }
 0x12e   :  { %973 = vmatpush3.bf16.msra.mxu1 %v1110_v38 }
 0x12f   :  { %974 = vmatprep.subr.bf16.mxu1 %v1111_v52 }
 0x132   :  { %975 = vmatpush3.bf16.msra.mxu1 %v1112_v53 }
 0x133   :  { %976 = vmatprep.subr.bf16.mxu1 %v1113_v54 }
 0x136   :  { %977 = vmatpush3.bf16.msra.mxu1 %v1114_v55 }
 0x1d9   :  { %v424_v42 = vpop.f32.mrf.mxu1 }
 0x1da   :  { %v425_v43 = vadd.f32 %v424_v42, %v383_v40 }
 0x1db   :  { %v426_v44 = vpop.f32.mrf.mxu1 }
 0x1dc   :  { %v427_v45 = vadd.f32 %v426_v44, %v387_v41  ;;  %v431_v46 = vmax.f32 %v425_v43, 0.0 }
 0x1dd   :  { %v428_v47 = vpop.f32.mrf.mxu1 }
 0x1de   :  { %v432_v48 = vmax.f32 %v427_v45, 0.0  ;;  %v433_v51 = vpack.c.bf16 %v431_v46, %v431_v46 }
 0x1df   :  { %v429_v49 = vpop.f32.mrf.mxu1 }
 0x1e0   :  { %v434_v50 = vpack.c.bf16 %v432_v48, %v432_v48 }
 0x1e2   :  { %673 = vmatprep.mubr.bf16.mxu0 %v434_v50 }
 0x1e3   :  { %674 = vmatmul.mubr.bf16.vlgmr.msra.gmra.mxu0 %v433_v51 }
 0x2a3   :  { %v675_v59 = vpop.f32.mrf.mxu0 }
 0x2a4   :  { %v676_v60 = vadd.f32 %v675_v59, %v634_v57 }
 0x2a5   :  { %v677_v61 = vpop.f32.mrf.mxu0 }
 0x2a6   :  { %v678_v62 = vadd.f32 %v677_v61, %v638_v58  ;;  %v682_v63 = vmax.f32 %v676_v60, 0.0 }
 0x2a7   :  { %v679_v0 = vpop.f32.mrf.mxu0 }
 0x2a8   :  { %v683_v1 = vmax.f32 %v678_v62, 0.0  ;;  %v684_v4 = vpack.c.bf16 %v682_v63, %v682_v63 }
 0x2a9   :  { %v680_v2 = vpop.f32.mrf.mxu0 }
 0x2aa   :  { %v685_v3 = vpack.c.bf16 %v683_v1, %v683_v1 }
 0x2ac   :  { %847 = vmatprep.mubr.bf16.mxu1 %v685_v3 }
 0x2ad   :  { %848 = vmatmul.mubr.bf16.vlgmr.msra.gmra.mxu1 %v684_v4 }
 0x36d   :  { %v978_v5 = vpop.f32.mrf.mxu1 }
 0x36f   :  { %v979_v7 = vpop.f32.mrf.mxu1 }
 0x370   :  { %v980_v9 = vadd.f32 %v979_v7, %v978_v5 }
 0x371   :  { %v981_v11 = vpop.f32.mrf.mxu1 }
 0x372   :  { %v850_v8 = vadd.f32 %v980_v9, %v718_v6 }
 0x373   :  { %v982_v12 = vpop.f32.mrf.mxu1 }
 0x374   :  { %1115 = vtanh.f32 %v850_v8 }
 0x381   :  { %v1116_v10 = vpop.eup %1115 }
 0x382   :  { %856 = vst [vmem:[#allocation11] sm:$0x1] %v1116_v10 }
 0x383   :  { %1228 = shalt.err (!%p1225_p1)
}
 0x384   :  { %866 = dma.vmem_to_hbm [thread:$0]  %s864_s4, 16, %s1325_s5, [#allocation4]  }
 0x385   :  { %1243 = dma.done.wait [#allocation4], 16  }
 0x386   :  { %1244 = vsyncadd [#allocation4], 4294967280 }
 0x387   :  { %870 = vsyncpa [#allocation3], 1 }
 0x388   :  { %871 = vsyncpa [#allocation6], 1 }
 0x389   :  { %872 = vsyncpa [#allocation9], 1 }
 0x38a   :  { %873 = vsyncpa [#allocation4], 1 }

</bundles_post_ra>
